<compile_context>
chip_gen: v7x
topology: tpu7x:2x2x1
jax: 0.10.0
libtpu: 0.0.40
codegen_flags: <defaults>
</compile_context>

<pallas_src>
import jax
import jax.numpy as jnp
from jax.experimental import pallas as pl
from jax.experimental.pallas import tpu as pltpu

LN_EPS = 1e-5
_TARGET_BLOCK_BYTES = 4 << 20     # ~4 MiB x block: near HBM roofline
_MIN_GRID_STEPS = 8               # let megacore shard the batch axis (v7x)


def factor_interaction_kernel(x_ref, ug_ref, v_ref, lnw_ref, lnb_ref, gb_ref,
                              o_ref):
    x = x_ref[...].astype(jnp.float32)                               # (TB, D)

    # x @ [gate_w^T | U] : lane 0 = gate pre-activation, lanes 1..R = x @ U.
    xu_all = jnp.dot(x, ug_ref[...].astype(jnp.float32),
                     preferred_element_type=jnp.float32)             # (TB, R+1)
    # v_ref row 0 is zero, so the gate lane contributes nothing to `cross`.
    cross = jnp.dot(xu_all, v_ref[...].astype(jnp.float32),
                    preferred_element_type=jnp.float32)              # (TB, D)

    interaction = x * cross                                          # (TB, D)

    # Two-pass LayerNorm over the feature dim (f32, biased variance).
    d = interaction.shape[-1]
    mean = jnp.sum(interaction, axis=-1, keepdims=True) * (1.0 / d)
    centered = interaction - mean
    var = jnp.sum(centered * centered, axis=-1, keepdims=True) * (1.0 / d)
    normed = centered * jax.lax.rsqrt(var + LN_EPS)
    normed = normed * lnw_ref[...].astype(jnp.float32) \
                    + lnb_ref[...].astype(jnp.float32)

    # Gate: Hardsigmoid(x @ w^T + b); pre-activation comes from MXU lane 0.
    z = xu_all[:, 0:1] + gb_ref[0]                                   # (TB, 1)
    gate = jnp.clip(z * (1.0 / 6.0) + 0.5, 0.0, 1.0)

    o_ref[...] = (gate * normed + (1.0 - gate) * x).astype(o_ref.dtype)


def _round_up(n, m):
    return ((n + m - 1) // m) * m


def _vmem_capacity_bytes():
    try:
        info = pltpu.get_tpu_info()
        cap = int(getattr(info, "vmem_capacity_bytes", 0))
        if cap > 0:
            return cap
    except Exception:
        pass
    return 64 << 20            # conservative fallback (v7x per-core VMEM)


def factor_interaction(x, U, V, gate_w, gate_b, ln_w, ln_b, *, tile_b=None):
    """x: (B, D). Returns (B, D). Same forward semantics as the PyTorch module."""
    B, D = x.shape
    R = U.shape[1]
    itemsize = jnp.dtype(x.dtype).itemsize
    sublane = {1: 32, 2: 16, 4: 8}.get(itemsize, 8)

    # --- fold gate projection into the first matmul ------------------------
    # Ug = [gate_w^T | U]  -> (D, R+1);   V_aug = [0 ; V]  -> (R+1, D)
    ug = jnp.concatenate([gate_w.reshape(1, D).T.astype(U.dtype), U], axis=1)
    v_aug = jnp.concatenate([jnp.zeros((1, D), dtype=V.dtype), V], axis=0)
    lnw = ln_w.reshape(1, D)
    lnb = ln_b.reshape(1, D)
    gb = gate_b.reshape(1).astype(jnp.float32)                       # SMEM scalar

    # --- generation-aware VMEM budget ---------------------------------------
    vmem_cap = _vmem_capacity_bytes()
    if vmem_cap >= (100 << 20):            # v5e / v6e: 128 MiB per core
        tile_budget, vmem_limit = 56 << 20, 100 << 20
    else:                                  # v7x: 64 MiB per core
        tile_budget, vmem_limit = 24 << 20, 48 << 20

    # --- batch tile: sized in bytes, clamped by VMEM / batch / megacore -----
    row_bytes = D * itemsize
    # per-row VMEM cost: double-buffered x + out blocks, plus ~6 live f32
    # full-tile temporaries inside the kernel body.
    per_row_vmem = D * (4 * itemsize + 6 * 4)
    if tile_b is None:
        max_rows_vmem = max(sublane,
                            (tile_budget // per_row_vmem) // sublane * sublane)
        tile_b = min(max(_TARGET_BLOCK_BYTES // row_bytes, 256), max_rows_vmem)
        # Keep >= _MIN_GRID_STEPS steps so ("parallel",) can use both v7x TCs,
        # as long as the resulting x block stays >= ~1 MiB.
        rows_min_steps = pl.cdiv(B, _MIN_GRID_STEPS)
        if rows_min_steps * row_bytes >= (1 << 20):
            tile_b = min(tile_b, rows_min_steps)
    tile_b = max(sublane, _round_up(int(tile_b), sublane))
    tile_b = min(tile_b, _round_up(B, sublane))      # don't over-tile tiny batches

    grid = (pl.cdiv(B, tile_b),)

    # --- cost hint for the surrounding XLA schedule -------------------------
    param_bytes = int(ug.size * ug.dtype.itemsize
                      + v_aug.size * v_aug.dtype.itemsize
                      + (lnw.size + lnb.size) * jnp.dtype(lnw.dtype).itemsize)
    cost = pl.CostEstimate(
        flops=int(4 * B * D * (R + 1) + 12 * B * D),
        transcendentals=int(B),
        bytes_accessed=int(2 * B * D * itemsize + param_bytes))

    return pl.pallas_call(
        factor_interaction_kernel,
        out_shape=jax.ShapeDtypeStruct((B, D), x.dtype),
        grid_spec=pltpu.PrefetchScalarGridSpec(
            num_scalar_prefetch=0,
            grid=grid,
            in_specs=[
                pl.BlockSpec((tile_b, D), lambda i: (i, 0)),          # x (batch-tiled)
                pl.BlockSpec((D, R + 1), lambda i: (0, 0)),           # [gate_w^T | U]
                pl.BlockSpec((R + 1, D), lambda i: (0, 0)),           # [0 ; V]
                pl.BlockSpec((1, D), lambda i: (0, 0)),               # LayerNorm weight
                pl.BlockSpec((1, D), lambda i: (0, 0)),               # LayerNorm bias
                pl.BlockSpec(memory_space=pltpu.MemorySpace.SMEM),    # gate bias scalar
            ],
            out_specs=pl.BlockSpec((tile_b, D), lambda i: (i, 0)),
        ),
        compiler_params=pltpu.CompilerParams(
            dimension_semantics=("parallel",),
            vmem_limit_bytes=int(vmem_limit)),
        cost_estimate=cost,
    )(x, ug, v_aug, lnw, lnb, gb)


def factor_interaction_ref(x, U, V, gate_w, gate_b, ln_w, ln_b):
    """Pure-JAX reference (mirrors the PyTorch forward)."""
    cross = (x @ U) @ V
    interaction = x * cross
    mean = jnp.mean(interaction, axis=-1, keepdims=True)
    var = jnp.mean((interaction - mean) ** 2, axis=-1, keepdims=True)
    normed = (interaction - mean) / jnp.sqrt(var + LN_EPS) * ln_w + ln_b
    z = x @ gate_w.reshape(1, -1).T + gate_b
    gate = jnp.clip(z / 6.0 + 0.5, 0.0, 1.0)
    return gate * normed + (1.0 - gate) * x


if __name__ == "__main__":
    B, D, R = 16, 32, 4

    key = jax.random.PRNGKey(0)
    kx, ku, kv, kgw, kgb = jax.random.split(key, 5)

    x = jax.random.normal(kx, (B, D), dtype=jnp.float32)

    # xavier_normal_ for U (D, R) and V (R, D): std = sqrt(2 / (fan_in + fan_out))
    xav_std = (2.0 / (D + R)) ** 0.5
    U = xav_std * jax.random.normal(ku, (D, R), dtype=jnp.float32)
    V = xav_std * jax.random.normal(kv, (R, D), dtype=jnp.float32)

    # nn.Linear(D, 1): weight (1, D), bias (1,) — deterministic synthetic init.
    bound = 1.0 / (D ** 0.5)
    gate_w = jax.random.uniform(kgw, (1, D), dtype=jnp.float32,
                                minval=-bound, maxval=bound)
    gate_b = jax.random.uniform(kgb, (1,), dtype=jnp.float32,
                                minval=-bound, maxval=bound)

    # nn.LayerNorm(D) defaults: weight = 1, bias = 0.
    ln_w = jnp.ones((D,), dtype=jnp.float32)
    ln_b = jnp.zeros((D,), dtype=jnp.float32)

    out = factor_interaction(x, U, V, gate_w, gate_b, ln_w, ln_b)
    out = jax.block_until_ready(out)

    ref = factor_interaction_ref(x, U, V, gate_w, gate_b, ln_w, ln_b)
    assert out.shape == (B, D)
    assert jnp.allclose(out, ref, atol=1e-4, rtol=1e-4), (
        f"max abs err {jnp.max(jnp.abs(out - ref))}")

    print("KERNEL_OK")
</pallas_src>

<mosaic_0001>
module attributes {stable_mosaic.version = 11 : i64} {
  func.func @factor_interaction_kernel(%arg0: i32, %arg1: memref<16x32xf32, #tpu.memory_space<vmem>>, %arg2: memref<32x5xf32, #tpu.memory_space<vmem>>, %arg3: memref<5x32xf32, #tpu.memory_space<vmem>>, %arg4: memref<1x32xf32, #tpu.memory_space<vmem>>, %arg5: memref<1x32xf32, #tpu.memory_space<vmem>>, %arg6: memref<1xf32, #tpu.memory_space<smem>>, %arg7: memref<16x32xf32, #tpu.memory_space<vmem>>) attributes {dimension_semantics = [#tpu.dimension_semantics<parallel>], iteration_bounds = array<i64: 1>, scalar_prefetch = 0 : i64, scratch_operands = 0 : i64, tpu.core_type = #tpu.core_type<tc>, window_params = [{transform_indices = @transform_0, window_bounds = array<i64: 16, 32>}, {pipeline_mode = #tpu.pipeline_mode<synchronous>, transform_indices = @transform_1, window_bounds = array<i64: 32, 5>}, {pipeline_mode = #tpu.pipeline_mode<synchronous>, transform_indices = @transform_2, window_bounds = array<i64: 5, 32>}, {pipeline_mode = #tpu.pipeline_mode<synchronous>, transform_indices = @transform_3, window_bounds = array<i64: 1, 32>}, {pipeline_mode = #tpu.pipeline_mode<synchronous>, transform_indices = @transform_4, window_bounds = array<i64: 1, 32>}, {transform_indices = @transform_5, window_bounds = array<i64: 1>}, {transform_indices = @transform_6, window_bounds = array<i64: 16, 32>}]} {
    %c0 = arith.constant 0 : index
    %c0_0 = arith.constant 0 : index
    %0 = vector.load %arg1[%c0, %c0_0] : memref<16x32xf32, #tpu.memory_space<vmem>>, vector<16x32xf32>
    %c0_1 = arith.constant 0 : index
    %c0_2 = arith.constant 0 : index
    %1 = vector.load %arg2[%c0_1, %c0_2] : memref<32x5xf32, #tpu.memory_space<vmem>>, vector<32x5xf32>
    %cst = arith.constant dense<0.000000e+00> : vector<16x5xf32>
    %2 = tpu.matmul %0, %1, %cst {dimension_numbers = #tpu.dot_dimension_numbers<[1], [0], [0], [1], [0, 0, 1, 1], [], []>} : vector<16x32xf32>, vector<32x5xf32>, vector<16x5xf32> -> vector<16x5xf32>
    %c0_3 = arith.constant 0 : index
    %c0_4 = arith.constant 0 : index
    %3 = vector.load %arg3[%c0_3, %c0_4] : memref<5x32xf32, #tpu.memory_space<vmem>>, vector<5x32xf32>
    %cst_5 = arith.constant dense<0.000000e+00> : vector<16x32xf32>
    %4 = tpu.matmul %2, %3, %cst_5 {dimension_numbers = #tpu.dot_dimension_numbers<[1], [0], [0], [1], [0, 0, 1, 1], [], []>} : vector<16x5xf32>, vector<5x32xf32>, vector<16x32xf32> -> vector<16x32xf32>
    %5 = arith.mulf %0, %4 : vector<16x32xf32>
    %cst_6 = arith.constant dense<0.000000e+00> : vector<16xf32>
    %6 = vector.multi_reduction <add>, %5, %cst_6 [1] : vector<16x32xf32> to vector<16xf32>
    %7 = vector.shape_cast %6 : vector<16xf32> to vector<16x1xf32>
    %cst_7 = arith.constant 3.125000e-02 : f32
    %8 = vector.broadcast %cst_7 : f32 to vector<16x1xf32>
    %9 = arith.mulf %7, %8 : vector<16x1xf32>
    %10 = vector.broadcast %9 : vector<16x1xf32> to vector<16x32xf32>
    %11 = arith.subf %5, %10 : vector<16x32xf32>
    %12 = arith.mulf %11, %11 : vector<16x32xf32>
    %cst_8 = arith.constant dense<0.000000e+00> : vector<16xf32>
    %13 = vector.multi_reduction <add>, %12, %cst_8 [1] : vector<16x32xf32> to vector<16xf32>
    %14 = vector.shape_cast %13 : vector<16xf32> to vector<16x1xf32>
    %cst_9 = arith.constant 3.125000e-02 : f32
    %15 = vector.broadcast %cst_9 : f32 to vector<16x1xf32>
    %16 = arith.mulf %14, %15 : vector<16x1xf32>
    %cst_10 = arith.constant 9.99999974E-6 : f32
    %17 = vector.broadcast %cst_10 : f32 to vector<16x1xf32>
    %18 = arith.addf %16, %17 : vector<16x1xf32>
    %19 = math.rsqrt %18 : vector<16x1xf32>
    %20 = vector.broadcast %19 : vector<16x1xf32> to vector<16x32xf32>
    %21 = arith.mulf %11, %20 : vector<16x32xf32>
    %c0_11 = arith.constant 0 : index
    %c0_12 = arith.constant 0 : index
    %22 = vector.load %arg4[%c0_11, %c0_12] : memref<1x32xf32, #tpu.memory_space<vmem>>, vector<1x32xf32>
    %23 = vector.broadcast %22 : vector<1x32xf32> to vector<16x32xf32>
    %24 = arith.mulf %21, %23 : vector<16x32xf32>
    %c0_13 = arith.constant 0 : index
    %c0_14 = arith.constant 0 : index
    %25 = vector.load %arg5[%c0_13, %c0_14] : memref<1x32xf32, #tpu.memory_space<vmem>>, vector<1x32xf32>
    %26 = vector.broadcast %25 : vector<1x32xf32> to vector<16x32xf32>
    %27 = arith.addf %24, %26 : vector<16x32xf32>
    %28 = vector.extract_strided_slice %2 {offsets = [0, 0], sizes = [16, 1], strides = [1, 1]} : vector<16x5xf32> to vector<16x1xf32>
    %c0_15 = arith.constant 0 : index
    %29 = memref.load %arg6[%c0_15] : memref<1xf32, #tpu.memory_space<smem>>
    %30 = vector.broadcast %29 : f32 to vector<16x1xf32>
    %31 = arith.addf %28, %30 : vector<16x1xf32>
    %cst_16 = arith.constant 0.166666672 : f32
    %32 = vector.broadcast %cst_16 : f32 to vector<16x1xf32>
    %33 = arith.mulf %31, %32 : vector<16x1xf32>
    %cst_17 = arith.constant 5.000000e-01 : f32
    %34 = vector.broadcast %cst_17 : f32 to vector<16x1xf32>
    %35 = arith.addf %33, %34 : vector<16x1xf32>
    %cst_18 = arith.constant 0.000000e+00 : f32
    %cst_19 = arith.constant 1.000000e+00 : f32
    %36 = vector.broadcast %cst_18 : f32 to vector<16x1xf32>
    %37 = arith.maximumf %36, %35 : vector<16x1xf32>
    %38 = vector.broadcast %cst_19 : f32 to vector<16x1xf32>
    %39 = arith.minimumf %38, %37 : vector<16x1xf32>
    %40 = vector.broadcast %39 : vector<16x1xf32> to vector<16x32xf32>
    %41 = arith.mulf %40, %27 : vector<16x32xf32>
    %cst_20 = arith.constant 1.000000e+00 : f32
    %42 = vector.broadcast %cst_20 : f32 to vector<16x1xf32>
    %43 = arith.subf %42, %39 : vector<16x1xf32>
    %44 = vector.broadcast %43 : vector<16x1xf32> to vector<16x32xf32>
    %45 = arith.mulf %44, %0 : vector<16x32xf32>
    %46 = arith.addf %41, %45 : vector<16x32xf32>
    %c0_21 = arith.constant 0 : index
    %c0_22 = arith.constant 0 : index
    %47 = vector.load %arg7[%c0_21, %c0_22] : memref<16x32xf32, #tpu.memory_space<vmem>>, vector<16x32xf32>
    tpu.vector_store %arg7[%c0_21, %c0_22], %46 {strides = array<i32>} : memref<16x32xf32, #tpu.memory_space<vmem>>, vector<16x32xf32>,
    return
  }
  func.func @transform_0(%arg0: i32) -> (i32, i32) {
    %c0_i32 = arith.constant 0 : i32
    %c0_i32_0 = arith.constant 0 : i32
    return %arg0, %c0_i32 : i32, i32
  }
  func.func @transform_1(%arg0: i32) -> (i32, i32) {
    %c0_i32 = arith.constant 0 : i32
    %c0_i32_0 = arith.constant 0 : i32
    %c0_i32_1 = arith.constant 0 : i32
    return %c0_i32, %c0_i32_0 : i32, i32
  }
  func.func @transform_2(%arg0: i32) -> (i32, i32) {
    %c0_i32 = arith.constant 0 : i32
    %c0_i32_0 = arith.constant 0 : i32
    %c0_i32_1 = arith.constant 0 : i32
    return %c0_i32, %c0_i32_0 : i32, i32
  }
  func.func @transform_3(%arg0: i32) -> (i32, i32) {
    %c0_i32 = arith.constant 0 : i32
    %c0_i32_0 = arith.constant 0 : i32
    %c0_i32_1 = arith.constant 0 : i32
    return %c0_i32, %c0_i32_0 : i32, i32
  }
  func.func @transform_4(%arg0: i32) -> (i32, i32) {
    %c0_i32 = arith.constant 0 : i32
    %c0_i32_0 = arith.constant 0 : i32
    %c0_i32_1 = arith.constant 0 : i32
    return %c0_i32, %c0_i32_0 : i32, i32
  }
  func.func @transform_5(%arg0: i32) -> i32 {
    %c0_i32 = arith.constant 0 : i32
    %c0_i32_0 = arith.constant 0 : i32
    return %c0_i32 : i32
  }
  func.func @transform_6(%arg0: i32) -> (i32, i32) {
    %c0_i32 = arith.constant 0 : i32
    %c0_i32_0 = arith.constant 0 : i32
    return %arg0, %c0_i32 : i32, i32
  }
}

</mosaic_0001>

<bundles_post_ra>
// kernel: tpu_custom_call.1
= control target key start
LH: loop header
LB: loop body
LE: loop exit
PB: predicated region body
PF: predicated region fallthrough
CT: control target
= control target key end

     0   :  { %vm31_vm0 = vcmask 261120   ;;  %s477_s0 = inlined_call_operand.vmem [shape: f32[16,32], index: 0, kind: input, shape index: {}]   ;;  %s478_s1 = inlined_call_operand.vmem [shape: f32[32,5], index: 1, kind: input, shape index: {}]   ;;  %s479_s2 = inlined_call_operand.vmem [shape: f32[5,32], index: 2, kind: input, shape index: {}]   ;;  %s480_s3 = inlined_call_operand.vmem [shape: f32[1,32], index: 3, kind: input, shape index: {}]   ;;  %s481_s4 = inlined_call_operand.vmem [shape: f32[1,32], index: 4, kind: input, shape index: {}]   ;;  %s482_s5 = inlined_call_operand.<no memory space> [shape: f32[1], index: 5, kind: input, shape index: {}]   ;;  %s483_s6 = inlined_call_operand.hbm [shape: f32[16,32], index: 6, kind: output, shape index: {}]  }
   0x1   :  { %v27_v0 = vld [vmem:[%s478_s1] sm:$0xff]  ;;  %v28_v1 = vld [vmem:[%s478_s1 + $0x8] sm:$0xff]  ;;  %v29_v2 = vld [vmem:[%s478_s1 + $0x10] sm:$0xff] }
   0x2   :  { %v336_v3 = vpack.c.bf16 %v28_v1, %v27_v0  ;;  %v30_v4 = vld [vmem:[%s478_s1 + $0x18] sm:$0xff]  ;;  %v432_v5 = vld [vmem:[%s477_s0] sm:$0xff] }
   0x3   :  { %v340_v6 = vpack.c.bf16 %v30_v4, %v29_v2  ;;  %328 = vmatprep.mubr.msk.f32.mxu0 %vm31_vm0, %v432_v5 }
   0x4   :  { %12 = vsyncpa [#allocation4], 0  ;;  %337 = vmatprep.subr.bf16.mxu0 %v336_v3  ;;  %v439_v7 = vld [vmem:[%s477_s0 + $0x8] sm:$0xff]  ;;  %v113_v8 = vld [vmem:[%s479_s2] sm:$0x1f]  ;;  %vm121_vm1 = vcmask 1044480   ;;  %v247_v10 = vstv %s482_s5 }
   0x5   :  { %339 = vmatpush3.bf16.msra.mxu0 %v336_v3  ;;  %331 = vmatprep.subr.msk.mxu1 %vm121_vm1, %v113_v8  ;;  %v378_v9 = vmov 0   ;;  %vm114_vm2 = vcmask 39936   ;;  %v309_v50 = vld [vmem:[%s480_s3] ss:$0 sm:$0xff]  ;;  %s379_s13 = smov [#allocation3]  }
   0x6   :  { %341 = vmatprep.subr.bf16.mxu0 %v340_v6  ;;  %332 = vmatpush3.msk.msra.mxu1 %vm121_vm1, %v113_v8  ;;  %v310_v52 = vld [vmem:[%s481_s4] ss:$0 sm:$0xff]  ;;  %s293_s14 = sshll.u32 %s379_s13, 4  ;;  %s294_s14 = int_to_ptr.vmem [resolvable:$true] %s293_s14 }
   0x7   :  { %349 = vset.pattern.permute.xlu1 %v378_v9  ;;  %348 = vset.pattern.permute.xlu0 %v378_v9  ;;  %s354_s3 = scalar_lea.vmem %s294_s14, 256  ;;  %p359_p1 = scmp.lt.s32.totalorder %s294_s14, %s294_s14 }
   0x8   :  { %p355_p0 = scmp.ne.s32.totalorder %s294_s14, %s354_s3  ;;  %p360_p2 = scmp.lt.s32.totalorder %s354_s3, %s354_s3 }
   0x9   :  { %343 = vmatpush3.bf16.msra.mxu0 %v340_v6 }
   0xa   :  { %p361_p3 = por %p360_p2, %p359_p1 }
   0xc   :  { %329 = vmatmul.mubr.msk.f32.vlgmr.msra.gmra.mrb[0].mxu0 %vm31_vm0, %v439_v7  ;;  %p362_p4 = pnand %p361_p3, %p355_p0 }
  0xdf   :  { %v330_v11 = vpop.f32.mrb[0].mxu0 }
  0xe0   :  { %v104_v12 = vpop.f32.mrb[1].mxu0  ;;  %v249_v13 = vadd.f32 %v330_v11, %v247_v10 }
  0xe1   :  { %v248_v14 = vadd.f32 %v247_v10, %v104_v12  ;;  %333 = vmatprep.mubr.msk.f32.mxu1 %vm114_vm2, %v104_v12 }
  0xe2   :  { %334 = vmatmul.mubr.msk.f32.vlgmr.msra.gmra.mrb[0].mxu1 %vm114_vm2, %v330_v11  ;;  %v251_v15 = vmul.f32 0.16666667, %v249_v13 }
  0xe3   :  { %v250_v16 = vmul.f32 0.16666667, %v248_v14 }
  0xe4   :  { %v253_v17 = vadd.f32 0.5, %v251_v15 }
  0xe5   :  { %v252_v18 = vadd.f32 0.5, %v250_v16 }
  0xe6   :  { %v255_v19 = vmax.f32 %v253_v17, 0.0 }
  0xe7   :  { %v254_v20 = vmax.f32 %v252_v18, 0.0 }
  0xe8   :  { %v257_v21 = vmin.f32 %v255_v19, 1.0 }
  0xe9   :  { %v256_v22 = vmin.f32 %v254_v20, 1.0 }
  0xea   :  { %265 = vperm.xlu1 %349, %v257_v21   ;;  %v271_v40 = vsub.f32 1.0, %v257_v21 }
  0xeb   :  { %v270_v23 = vsub.f32 1.0, %v256_v22 }
  0xee   :  { %274 = vperm.xlu1 %349, %v270_v23  }
 0x169   :  { %v266_v41 = vpop.permute.xlu1 %265 }
 0x16d   :  { %v275_v42 = vpop.permute.xlu1 %274 }
 0x16e   :  { %v282_v0 = vmul.f32 %v275_v42, %v432_v5 }
 0x1b5   :  { %v335_v24 = vpop.f32.mrb[0].mxu1 }
 0x1b6   :  { %v191_v25 = vpop.f32.mrb[1].mxu1  ;;  %v201_v27 = vmul.f32 %v335_v24, %v439_v7 }
 0x1b7   :  { %v200_v26 = vmul.f32 %v191_v25, %v432_v5 }
 0x1b8   :  { %v205_v29 = vsel %vm31_vm0, %v201_v27, 0.0 }
 0x1b9   :  { %v202_v28 = vsel %vm31_vm0, %v200_v26, 0.0 }
 0x1ba   :  { %203 = vadd.xlane.f32.xlu0 %v202_v28 }
 0x1be   :  { %206 = vadd.xlane.f32.xlu0 %v205_v29 }
 0x1d4   :  { %260 = vperm.xlu0 %348, %v256_v22  }
 0x247   :  { %v204_v30 = vpop.xlane.xlu0 %203 }
 0x248   :  { %v208_v31 = vmul.f32 0.03125, %v204_v30 }
 0x24a   :  { %v210_v34 = vsub.f32 %v200_v26, %v208_v31 }
 0x24b   :  { %v207_v32 = vpop.xlane.xlu0 %206 }
 0x24c   :  { %v209_v33 = vmul.f32 0.03125, %v207_v32  ;;  %v212_v38 = vmul.f32 %v210_v34, %v210_v34 }
 0x24e   :  { %v211_v35 = vsub.f32 %v201_v27, %v209_v33  ;;  %v214_v39 = vsel %vm31_vm0, %v212_v38, 0.0 }
 0x250   :  { %v213_v36 = vmul.f32 %v211_v35, %v211_v35 }
 0x252   :  { %v217_v37 = vsel %vm31_vm0, %v213_v36, 0.0 }
 0x253   :  { %218 = vadd.xlane.f32.xlu1 %v217_v37  ;;  %v261_v63 = vpop.permute.xlu0 %260 }
 0x257   :  { %215 = vadd.xlane.f32.xlu1 %v214_v39 }
 0x268   :  { %279 = vperm.xlu1 %349, %v271_v40  }
 0x2e0   :  { %v219_v43 = vpop.xlane.xlu1 %218 }
 0x2e1   :  { %v221_v44 = vmul.f32 0.03125, %v219_v43 }
 0x2e3   :  { %v223_v45 = vadd.f32 1e-05, %v221_v44 }
 0x2e4   :  { %v216_v46 = vpop.xlane.xlu1 %215 }
 0x2e5   :  { %350 = vrsqrt.f32 %v223_v45  ;;  %v220_v47 = vmul.f32 0.03125, %v216_v46 }
 0x2e7   :  { %v222_v48 = vadd.f32 1e-05, %v220_v47 }
 0x2e8   :  { %v280_v55 = vpop.permute.xlu1 %279 }
 0x2e9   :  { %352 = vrsqrt.f32 %v222_v48  ;;  %v283_v60 = vmul.f32 %v280_v55, %v439_v7 }
 0x2ef   :  { %v351_v49 = vpop.eup %350 }
 0x2f0   :  { %v227_v51 = vmul.f32 %v351_v49, %v211_v35 }
 0x2f2   :  { %v236_v53 = vmul.f32 %v309_v50, %v227_v51 }
 0x2f3   :  { %v353_v54 = vpop.eup %352 }
 0x2f4   :  { %v226_v56 = vmul.f32 %v353_v54, %v210_v34  ;;  %v245_v57 = vadd.f32 %v310_v52, %v236_v53 }
 0x2f6   :  { %v235_v58 = vmul.f32 %v309_v50, %v226_v56  ;;  %v269_v59 = vmul.f32 %v266_v41, %v245_v57 }
 0x2f8   :  { %v244_v61 = vadd.f32 %v310_v52, %v235_v58  ;;  %v285_v62 = vadd.f32 %v283_v60, %v269_v59 }
 0x2fa   :  { %v268_v1 = vmul.f32 %v261_v63, %v244_v61  ;;  %287 = vst.msk [vmem:[#allocation3 + $0x8] sm:$0xff] %vm31_vm0, %v285_v62 }
 0x2fc   :  { %v284_v2 = vadd.f32 %v282_v0, %v268_v1 }
 0x2fe   :  { %286 = vst.msk [vmem:[#allocation3] sm:$0xff] %vm31_vm0, %v284_v2 }
 0x2ff   :  { %365 = shalt.err (!%p362_p4)
}
 0x300   :  { %s366_s16 = scalar_lea.hbm %s483_s6, 256 }
 0x301   :  { %p367_p5 = scmp.ne.s32.totalorder %s483_s6, %s366_s16  ;;  %p370_p6 = scmp.lt.u32.totalorder %s366_s16, %s483_s6 }
 0x303   :  { %p372_p7 = pnand %p370_p6, %p367_p5 }
 0x305   :  { %375 = shalt.err (!%p372_p7)
}
 0x306   :  { %s380_s21 = smov 128   ;;  %s381_s22 = smov 8  }
 0x307   :  { %299 = dma.vmem_to_hbm [thread:$0]  %s294_s14, 256, %s483_s6, [#allocation4], %s380_s21, %s380_s21, %s381_s22  }
 0x308   :  { %376 = dma.done.wait [#allocation4], 256  }
 0x309   :  { %377 = vsyncadd [#allocation4], 4294967040 }
 0x30a   :  { %303 = vsyncpa [#allocation4], 1 }

</bundles_post_ra>
